<compile_context>
chip_gen: v7x
topology: tpu7x:2x2x1
jax: 0.10.0
libtpu: 0.0.40
codegen_flags: <defaults>
</compile_context>

<pallas_src>
import functools

import jax
import jax.numpy as jnp
from jax.experimental import pallas as pl
from jax.experimental.pallas import tpu as pltpu

LANE = 128
SUBLANE = 8


def _round_up(x, m):
    return ((x + m - 1) // m) * m


def _gcn_kernel(a_ref, xw_ref, b_ref, o_ref, *, xw_resident):
    # a_ref  : (tile_n, tile_k)          bf16 adjacency tile (rows = destination nodes)
    # xw_ref : (n_cols, F_pad) resident  bf16 X @ W   (or (tile_k, F_pad) slab if streamed)
    # b_ref  : (1, F_pad)                f32 bias (lane-padded)
    # o_ref  : (tile_n, F_pad)           f32 output tile; resident across the k axis and
    #                                    used directly as the accumulator (no scratch).
    k = pl.program_id(1)
    tk = a_ref.shape[1]

    @pl.when(k == 0)
    def _():
        o_ref[...] = jnp.zeros_like(o_ref)

    if xw_resident:
        xw_k = xw_ref[pl.ds(pl.multiple_of(k * tk, LANE), tk), :]
    else:
        xw_k = xw_ref[...]

    # Native bf16 x bf16 MXU matmul, f32 accumulation directly into the output block.
    o_ref[...] += jnp.dot(a_ref[...], xw_k, preferred_element_type=jnp.float32)

    @pl.when(k == pl.num_programs(1) - 1)
    def _():
        o_ref[...] = jnp.maximum(o_ref[...] + b_ref[...], 0.0)


def gcn_forward(adj, feat, weight, bias, *, tile_n=512, tile_k=2048):
    """adj: [N, N] 0/1 (ideally already bf16), feat: [N, F_in], weight: [F_in, F_out]."""
    N, F_in = feat.shape
    F_out = weight.shape[1]
    F_pad = _round_up(F_out, LANE)

    # Fold the linear layer once (tiny vs. the A @ XW aggregation); lane-pad W and b.
    # XW is cast to bf16 so the kernel's matmul is a native bf16 MXU pass.
    w_pad = jnp.zeros((F_in, F_pad), jnp.float32).at[:, :F_out].set(
        weight.astype(jnp.float32))
    b_pad = jnp.zeros((1, F_pad), jnp.float32).at[:, :F_out].set(
        bias.reshape(1, F_out).astype(jnp.float32))
    xw = (feat.astype(jnp.float32) @ w_pad).astype(jnp.bfloat16)      # (N, F_pad)

    # Row tiles: multiple of 8 (sublane), clamped near N/2 for small graphs so we get
    # >=2 row tiles (keeps both v7x TensorCores busy) without gross zero-row padding.
    half_rows = max(SUBLANE, _round_up((N + 1) // 2, SUBLANE))
    tile_n = max(SUBLANE, min(tile_n, half_rows))
    n_rows = _round_up(N, tile_n)
    # K tiles: lane dimension of A, multiple of 128.
    tile_k = max(LANE, min(tile_k, _round_up(N, LANE)))
    n_cols = _round_up(N, tile_k)

    # TODO(synk): in production, store the adjacency pre-cast to bf16 and pre-padded at
    # graph-construction time; these are N^2 XLA passes outside the kernel when needed.
    a = adj if adj.dtype == jnp.bfloat16 else adj.astype(jnp.bfloat16)
    if (n_rows, n_cols) != a.shape:
        a = jnp.pad(a, ((0, n_rows - a.shape[0]), (0, n_cols - a.shape[1])))
    if n_cols != xw.shape[0]:
        xw = jnp.pad(xw, ((0, n_cols - xw.shape[0]), (0, 0)))

    # Keep X@W resident in VMEM (one block, never re-DMA'd) when it fits; otherwise
    # fall back to streaming one k-slab per grid step.
    xw_resident_bytes = 2 * n_cols * F_pad * 2           # assume double-buffered bf16
    xw_resident = xw_resident_bytes <= (16 << 20)
    if xw_resident:
        xw_spec = pl.BlockSpec((n_cols, F_pad), lambda i, k: (0, 0))
    else:
        xw_spec = pl.BlockSpec((tile_k, F_pad), lambda i, k: (k, 0))

    # Explicit VMEM budget (v7x: 64 MiB physical / 32 MiB default scoped limit).
    est = (2 * tile_n * tile_k * 2                        # A, double-buffered bf16
           + (xw_resident_bytes if xw_resident else 2 * tile_k * F_pad * 2)
           + 2 * tile_n * F_pad * 4                       # f32 output/accumulator
           + 2 * F_pad * 4)                               # bias
    vmem_limit = int(min(max(2 * est, 32 << 20), 48 << 20))

    grid = (n_rows // tile_n, n_cols // tile_k)

    out = pl.pallas_call(
        functools.partial(_gcn_kernel, xw_resident=xw_resident),
        out_shape=jax.ShapeDtypeStruct((n_rows, F_pad), jnp.float32),
        grid_spec=pltpu.PrefetchScalarGridSpec(
            num_scalar_prefetch=0,
            grid=grid,
            in_specs=[
                pl.BlockSpec((tile_n, tile_k), lambda i, k: (i, k)),   # A tile
                xw_spec,                                               # X @ W
                pl.BlockSpec((1, F_pad), lambda i, k: (0, 0)),         # bias
            ],
            out_specs=pl.BlockSpec((tile_n, F_pad), lambda i, k: (i, 0)),
        ),
        compiler_params=pltpu.CompilerParams(
            dimension_semantics=("parallel", "arbitrary"),
            vmem_limit_bytes=vmem_limit),
    )(a, xw, b_pad)

    # Drop row/lane padding (already f32, matching the module's dtype).
    return out[:N, :F_out]


def gcn_reference(adj, feat, weight, bias, *, bf16_xw=False):
    """Pure-JAX reference. bf16_xw=True mirrors the kernel's bf16 rounding of X@W."""
    hp = jax.lax.Precision.HIGHEST
    xw = jnp.matmul(feat.astype(jnp.float32), weight.astype(jnp.float32), precision=hp)
    if bf16_xw:
        xw = xw.astype(jnp.bfloat16).astype(jnp.float32)
    h = jnp.matmul(adj.astype(jnp.float32), xw, precision=hp) + bias.astype(jnp.float32)
    return jnp.maximum(h, 0.0)


if __name__ == "__main__":
    key = jax.random.PRNGKey(0)
    k_adj, k_feat, k_w, k_b = jax.random.split(key, 4)

    N = 300        # number of nodes (deliberately NOT a multiple of the tile size)
    F_in = 32      # in_feats
    F_out = 16     # out_feats

    # Deterministic random graph: ~10% edge density, dense 0/1 adjacency stored in bf16
    # (exact for 0/1) so the kernel path does no wrapper-side cast.
    adj = (jax.random.uniform(k_adj, (N, N)) < 0.1).astype(jnp.bfloat16)
    feat = jax.random.normal(k_feat, (N, F_in), dtype=jnp.float32)

    # Deterministic Linear(in_feats, out_feats) params (torch-style uniform init).
    bound = 1.0 / jnp.sqrt(jnp.float32(F_in))
    weight = jax.random.uniform(k_w, (F_in, F_out), minval=-bound, maxval=bound,
                                dtype=jnp.float32)
    bias = jax.random.uniform(k_b, (F_out,), minval=-bound, maxval=bound,
                              dtype=jnp.float32)

    ref_matched = gcn_reference(adj, feat, weight, bias, bf16_xw=True)   # same math
    ref_f32 = gcn_reference(adj, feat, weight, bias, bf16_xw=False)      # module spec

    # 1) Small tiles: exercises the multi-step row grid + K accumulation + ragged-N path.
    out_small = gcn_forward(adj, feat, weight, bias, tile_n=128, tile_k=128)
    out_small = jax.block_until_ready(out_small)
    # 2) Production defaults: resident XW, clamped row tiles (>=2 row tiles), single K step.
    out_default = gcn_forward(adj, feat, weight, bias)
    out_default = jax.block_until_ready(out_default)

    for out in (out_small, out_default):
        assert out.shape == (N, F_out)
        # Tight check vs. a reference that uses the same bf16-rounded X@W.
        assert jnp.allclose(out, ref_matched, atol=1e-3, rtol=1e-3), \
            "mismatch vs bf16-matched reference"
        # Loose check vs. the full-f32 module semantics (bf16 X@W rounding only).
        assert jnp.allclose(out, ref_f32, atol=1e-1, rtol=5e-2), \
            "mismatch vs f32 reference"

    print("KERNEL_OK")
</pallas_src>

<mosaic_0001>
module attributes {stable_mosaic.version = 11 : i64} {
  func.func @_gcn_kernel(%arg0: i32, %arg1: i32, %arg2: memref<128x128xbf16, #tpu.memory_space<vmem>>, %arg3: memref<384x128xbf16, #tpu.memory_space<vmem>>, %arg4: memref<1x128xf32, #tpu.memory_space<vmem>>, %arg5: memref<128x128xf32, #tpu.memory_space<vmem>>) attributes {dimension_semantics = [#tpu.dimension_semantics<parallel>, #tpu.dimension_semantics<arbitrary>], iteration_bounds = array<i64: 3, 3>, scalar_prefetch = 0 : i64, scratch_operands = 0 : i64, tpu.core_type = #tpu.core_type<tc>, window_params = [{transform_indices = @transform_0, window_bounds = array<i64: 128, 128>}, {pipeline_mode = #tpu.pipeline_mode<synchronous>, transform_indices = @transform_1, window_bounds = array<i64: 384, 128>}, {pipeline_mode = #tpu.pipeline_mode<synchronous>, transform_indices = @transform_2, window_bounds = array<i64: 1, 128>}, {transform_indices = @transform_3, window_bounds = array<i64: 128, 128>}]} {
    %c0_i32 = arith.constant 0 : i32
    %0 = arith.cmpi eq, %arg1, %c0_i32 : i32
    %1 = arith.extui %0 : i1 to i32
    %c0_i32_0 = arith.constant 0 : i32
    %2 = arith.cmpi ne, %1, %c0_i32_0 : i32
    scf.if %2 {
      %cst_8 = arith.constant 0.000000e+00 : f32
      %15 = vector.broadcast %cst_8 : f32 to vector<128x128xf32>
      %c0_9 = arith.constant 0 : index
      %c0_10 = arith.constant 0 : index
      %16 = vector.load %arg5[%c0_9, %c0_10] : memref<128x128xf32, #tpu.memory_space<vmem>>, vector<128x128xf32>
      tpu.vector_store %arg5[%c0_9, %c0_10], %15 {strides = array<i32>} : memref<128x128xf32, #tpu.memory_space<vmem>>, vector<128x128xf32>,
    } else {
    }
    %c128_i32 = arith.constant 128 : i32
    %3 = arith.muli %arg1, %c128_i32 : i32
    %4 = tpu.assume_multiple %3, 128 : i32
    %5 = arith.index_cast %4 : i32 to index
    %c0 = arith.constant 0 : index
    %6 = vector.load %arg3[%5, %c0] : memref<384x128xbf16, #tpu.memory_space<vmem>>, vector<128x128xbf16>
    %c0_1 = arith.constant 0 : index
    %c0_2 = arith.constant 0 : index
    %7 = vector.load %arg5[%c0_1, %c0_2] : memref<128x128xf32, #tpu.memory_space<vmem>>, vector<128x128xf32>
    %c0_3 = arith.constant 0 : index
    %c0_4 = arith.constant 0 : index
    %8 = vector.load %arg2[%c0_3, %c0_4] : memref<128x128xbf16, #tpu.memory_space<vmem>>, vector<128x128xbf16>
    %cst = arith.constant dense<0.000000e+00> : vector<128x128xf32>
    %9 = tpu.matmul %8, %6, %cst {dimension_numbers = #tpu.dot_dimension_numbers<[1], [0], [0], [1], [0, 0, 1, 1], [], []>} : vector<128x128xbf16>, vector<128x128xbf16>, vector<128x128xf32> -> vector<128x128xf32>
    %10 = arith.addf %7, %9 : vector<128x128xf32>
    %c0_5 = arith.constant 0 : index
    %c0_6 = arith.constant 0 : index
    %11 = vector.load %arg5[%c0_5, %c0_6] : memref<128x128xf32, #tpu.memory_space<vmem>>, vector<128x128xf32>
    tpu.vector_store %arg5[%c0_5, %c0_6], %10 {strides = array<i32>} : memref<128x128xf32, #tpu.memory_space<vmem>>, vector<128x128xf32>,
    %c2_i32 = arith.constant 2 : i32
    %12 = arith.cmpi eq, %arg1, %c2_i32 : i32
    %13 = arith.extui %12 : i1 to i32
    %c0_i32_7 = arith.constant 0 : i32
    %14 = arith.cmpi ne, %13, %c0_i32_7 : i32
    scf.if %14 {
      %c0_8 = arith.constant 0 : index
      %c0_9 = arith.constant 0 : index
      %15 = vector.load %arg5[%c0_8, %c0_9] : memref<128x128xf32, #tpu.memory_space<vmem>>, vector<128x128xf32>
      %c0_10 = arith.constant 0 : index
      %c0_11 = arith.constant 0 : index
      %16 = vector.load %arg4[%c0_10, %c0_11] : memref<1x128xf32, #tpu.memory_space<vmem>>, vector<1x128xf32>
      %17 = vector.broadcast %16 : vector<1x128xf32> to vector<128x128xf32>
      %18 = arith.addf %15, %17 : vector<128x128xf32>
      %cst_12 = arith.constant 0.000000e+00 : f32
      %19 = vector.broadcast %cst_12 : f32 to vector<128x128xf32>
      %20 = arith.maximumf %18, %19 : vector<128x128xf32>
      %c0_13 = arith.constant 0 : index
      %c0_14 = arith.constant 0 : index
      %21 = vector.load %arg5[%c0_13, %c0_14] : memref<128x128xf32, #tpu.memory_space<vmem>>, vector<128x128xf32>
      tpu.vector_store %arg5[%c0_13, %c0_14], %20 {strides = array<i32>} : memref<128x128xf32, #tpu.memory_space<vmem>>, vector<128x128xf32>,
    } else {
    }
    return
  }
  func.func @transform_0(%arg0: i32, %arg1: i32) -> (i32, i32) {
    %c0_i32 = arith.constant 0 : i32
    return %arg0, %arg1 : i32, i32
  }
  func.func @transform_1(%arg0: i32, %arg1: i32) -> (i32, i32) {
    %c0_i32 = arith.constant 0 : i32
    %c0_i32_0 = arith.constant 0 : i32
    %c0_i32_1 = arith.constant 0 : i32
    return %c0_i32, %c0_i32_0 : i32, i32
  }
  func.func @transform_2(%arg0: i32, %arg1: i32) -> (i32, i32) {
    %c0_i32 = arith.constant 0 : i32
    %c0_i32_0 = arith.constant 0 : i32
    %c0_i32_1 = arith.constant 0 : i32
    return %c0_i32, %c0_i32_0 : i32, i32
  }
  func.func @transform_3(%arg0: i32, %arg1: i32) -> (i32, i32) {
    %c0_i32 = arith.constant 0 : i32
    %c0_i32_0 = arith.constant 0 : i32
    return %arg0, %c0_i32 : i32, i32
  }
}

</mosaic_0001>

<bundles_post_ra>
// kernel: tpu_custom_call.1
= control target key start
LH: loop header
LB: loop body
LE: loop exit
PB: predicated region body
PF: predicated region fallthrough
CT: control target
= control target key end

     0   :  { %s1545_s0 = inlined_call_operand.hbm [shape: bf16[384,384], index: 0, kind: input, shape index: {}]   ;;  %s1546_s1 = inlined_call_operand.hbm [shape: bf16[384,128], index: 1, kind: input, shape index: {}]   ;;  %s1547_s2 = inlined_call_operand.vmem [shape: f32[1,128], index: 2, kind: input, shape index: {}]   ;;  %s1548_s3 = inlined_call_operand.hbm [shape: f32[384,128], index: 3, kind: output, shape index: {}]  }
   0x1   :  { %1562 = sst [smem:[#allocation16_spill]] %s1546_s1 }
   0x2   :  { %8 = vsyncpa [#allocation3], 0 }
   0x3   :  { %10 = vsyncpa [#allocation3 + $0x1], 0 }
   0x4   :  { %11 = vsyncpa [#allocation6], 0 }
   0x5   :  { %12 = vsyncpa [#allocation4], 0 }
   0x6   :  { %14 = vsyncpa [#allocation4 + $0x1], 0  ;;  %s1163_s12 = smov 0   ;;  %s1165_s13 = smov 0  }
   0x7   :  { %s1167_s14 = smov 0   ;;  %s1169_s15 = smov 0  }
   0x8   :  { %s1171_s16 = smov 0   ;;  %s1173_s17 = smov 0  }
   0x9   :  { %s1175_s18 = smov 0   ;;  %s1177_s19 = smov 0  }
   0xa   :  { %s1179_s20 = smov 0   ;;  %s1181_s21 = smov 0  }
   0xb   :  { %s1183_s22 = smov 0  }
   0xc LB: > { %1563 = sst [smem:[#allocation11_spill]] %s1092_s12  ;;  %s708_s23 = sadd.s32 4294967295, %s1132_s22   ;;  %s1132_s22 = sphi %s1183_s22, %s20_s22   ;;  %s1128_s21 = sphi %s1181_s21, %s1600_s21   ;;  %s1124_s20 = sphi %s1179_s20, %s1599_s20   ;;  %s1120_s19 = sphi %s1177_s19, %s1598_s19   ;;  %s1116_s18 = sphi %s1175_s18, %s1589_s18   ;;  %s1112_s17 = sphi %s1173_s17, %s1597_s17   ;;  %s1108_s16 = sphi %s1171_s16, %s1596_s16   ;;  %s1104_s15 = sphi %s1169_s15, %s1595_s15   ;;  %s1100_s14 = sphi %s1167_s14, %s1594_s14   ;;  %s1096_s13 = sphi %s1165_s13, %s1593_s13   ;;  %s1092_s12 = sphi %s1163_s12, %s1592_s12  }
   0xd   : > { %1564 = sst [smem:[#allocation12_spill]] %s1124_s20  ;;  %s709_s24 = sadd.s32 4294967294, %s1132_s22  }
   0xe   : > { %p48_p0 = scmp.ne.s32.totalorder %s1112_s17, %s1108_s16  ;;  %p49_p1 = scmp.eq.s32.totalorder %s1132_s22, 0 }
   0xf   : > { %p54_p2 = scmp.ne.s32.totalorder %s1108_s16, %s1104_s15  ;;  %p1223_p3 = scmp.eq.s32.totalorder %s708_s23, 0 }
  0x10   : > { %p1228_p4 = por %p49_p1, %p48_p0  ;;  %p119_p5 = scmp.ne.s32.totalorder %s1100_s14, %s1096_s13 }
  0x11   : > { %s1565_s26 = scalar_select %p1223_p3, 1, 0 }
  0x12   : > { %p1236_p6 = por %p1223_p3, %p54_p2  ;;  %p120_p7 = scmp.eq.s32.totalorder %s708_s23, 8 }
  0x13   : > { %p125_p8 = scmp.ne.s32.totalorder %s1096_s13, %s1092_s12  ;;  %p126_p9 = scmp.eq.s32.totalorder %s709_s24, 8 }
  0x14   : > { %s1567_s29 = scalar_select %p1236_p6, 1, 0 }
  0x15   : > { %p1242_p10 = por %p120_p7, %p119_p5  ;;  %p710_p11 = scmp.ge.s32.totalorder %s1132_s22, 1 }
  0x16   : > { %p1247_p12 = por %p126_p9, %p125_p8  ;;  %p133_p13 = scmp.lt.s32.totalorder %s1132_s22, 10 }
  0x17   : > { %s1568_s30 = scalar_select %p1242_p10, 1, 0 }
  0x18   : > { %s1569_s4 = scalar_select %p1247_p12, 1, 0 }
  0x19   : > { %p1252_p0 = pnand %p710_p11, %p133_p13  ;;  %s1134_s6 = smov [#allocation5]  }
  0x1a   : > { %1570 = sst [smem:[#allocation13_spill]] %s1569_s4  ;;  %s145_s7 = sshll.u32 %s1134_s6, 4  ;;  %s146_s7 = int_to_ptr.vmem [resolvable:$true] %s145_s7 }
  0x1b   : > { %s1571_s5 = scalar_select %p1252_p0, 1, 0 }
  0x1c   : > { %p821_p1 = pneg %p1252_p0  ;;  %p834_p2 = scmp.lt.s32.totalorder %s1132_s22, 9 }
  0x1d   : > { %s1574_s1 = sld [smem:[#allocation16_spill]] }
  0x1e   : > { %p1261_p5 = pnand %p821_p1, %p1223_p3  ;;  %p1267_p7 = pnand %p834_p2, %p1228_p4 }
  0x20   : > { %s1573_s9 = scalar_select %p1267_p7, 1, 0 }
  0x21   : > { %p950_p9 = pneg %p1261_p5 }
  0x23   : > { %s948_s15 = scalar_lea.hbm %s1574_s1, 3072 }
  0x24   : > { %p949_p8 = scmp.ne.s32.totalorder %s1574_s1, %s948_s15  ;;  %p955_p1 = scmp.lt.u32.totalorder %s948_s15, %s1574_s1 }
  0x26   : > { %p951_p11 = pnand %p950_p9, %p949_p8 }
  0x28   : > { %p952_p13 = pneg %p951_p11 }
  0x2a   : > { %p957_p4 = pnand %p955_p1, %p952_p13 }
  0x2c   : > { %960 = shalt.err (!%p957_p4)
}
  0x2d   : > { %s961_s28 = scalar_lea.vmem %s146_s7, 3072  ;;  %p969_p3 = scmp.lt.s32.totalorder %s146_s7, %s146_s7 }
  0x2e   : > { %p962_p2 = scmp.ne.s32.totalorder %s146_s7, %s961_s28  ;;  %p970_p6 = scmp.lt.s32.totalorder %s961_s28, %s961_s28 }
  0x30   : > { %p964_p12 = pnand %p962_p2, %p950_p9  ;;  %p971_p0 = por %p970_p6, %p969_p3 }
  0x32   : > { %p965_p10 = pneg %p964_p12 }
  0x34   : > { %p972_p7 = pnand %p971_p0, %p965_p10 }
  0x36   : > { %975 = shalt.err (!%p972_p7)
}
  0x37   : > { %s1556_s10 = smov 64   ;;  %s1557_s25 = smov 4  }
  0x38   : > { %824 = dma.hbm_to_vmem [thread:$0]  (!%p1261_p5), %s1574_s1, 3072, %s146_s7, [#allocation6], %s1556_s10, %s1556_s10, %s1557_s25  }
  0x39   : > { %s29_s23 = sadd.s32 1, %s1124_s20  ;;  %s32_s24 = sadd.s32 1, %s1128_s21 }
  0x3a   : > { %p30_p3 = scmp.ge.s32.totalorder %s29_s23, 3  ;;  %s162_s6 = sand.u32 1, %s1112_s17  }
  0x3b   : > { %s713_s28 = sshll.u32 %s162_s6, 6  ;;  %s812_s27 = smul.u32 48, %s1128_s21 }
  0x3c   : > { %s1602_s23 = smov (%p30_p3, %s29_s23), 0  ;;  %s1604_s24 = smov (!%p30_p3, %s32_s24), %s1128_s21 }
  0x3d   : > { %1575 = sst [smem:[#allocation14_spill]] %s1602_s23  ;;  %s37_s8 = ssub.s32 %s1124_s20, %s1602_s23 }
  0x3e   : > { %p34_p6 = scmp.ge.s32.totalorder %s1604_s24, 3  ;;  %s166_s4 = scalar_lea.vmem [#allocation2], %s713_s28 }
  0x3f   : > { %s175_s7 = sshll.u32 %s166_s4, 4  ;;  %s172_s11 = sadd.s32 %s1124_s20, %s812_s27  ;;  %s1302_s7 = int_to_ptr.vmem [resolvable:$true] %s175_s7 }
  0x40   : > { %s1606_s24 = smov (%p34_p6, %s1604_s24), 0  ;;  %s716_s10 = sshll.u32 %s172_s11, 6 }
  0x41   : > { %1576 = sst [smem:[#allocation15_spill]] %s1606_s24  ;;  %s36_s15 = ssub.s32 %s1128_s21, %s1606_s24 }
  0x42   : > { %s38_s25 = sor.u32 %s37_s8, %s36_s15  ;;  %p107_p10 = scmp.eq.s32.totalorder %s36_s15, 0 }
  0x43   : > { %p39_p12 = scmp.eq.s32.totalorder %s38_s25, 0  ;;  %s1309_s23 = scalar_lea.hbm %s1545_s0, %s716_s10 }
  0x44   : > { %s1577_s28 = sadd.s32 1, %s1100_s14  ;;  %s1578_s27 = sadd.s32 1, %s1112_s17 }
  0x45   : > { %s1314_s4 = scalar_select %p107_p10, %s1100_s14, %s1577_s28  }
  0x46   : > { %s1319_s20 = scalar_select %p39_p12, %s1112_s17, %s1578_s27  }
  0x47   : > { %s1321_s24 = scalar_lea.sflag [#allocation3], %s162_s6  ;;  %s976_s8 = scalar_lea.hbm %s1309_s23, 1024 }
  0x48   : > { %p977_p0 = scmp.ne.s32.totalorder %s1309_s23, %s976_s8  ;;  %p1579_p5 = scmp.ne.s32.totalorder %s1573_s9, 0 }
  0x49   : > { %s981_s10 = scalar_lea.hbm %s1545_s0, 9216  ;;  %p982_p11 = scmp.lt.u32.totalorder %s1309_s23, %s1545_s0 }
  0x4a   : > { %p978_p7 = pneg %p1579_p5  ;;  %p983_p13 = scmp.lt.u32.totalorder %s981_s10, %s976_s8 }
  0x4b   : > { %p985_p4 = scmp.lt.u32.totalorder %s976_s8, %s1309_s23 }
  0x4c   : > { %p979_p8 = pnand %p978_p7, %p977_p0  ;;  %p984_p1 = por %p983_p13, %p982_p11 }
  0x4e   : > { %p980_p9 = pneg %p979_p8  ;;  %p986_p2 = por %p985_p4, %p984_p1 }
  0x50   : > { %p987_p3 = pnand %p986_p2, %p980_p9 }
  0x52   : > { %990 = shalt.err (!%p987_p3)
}
  0x53   : > { %s991_s6 = scalar_lea.vmem %s1302_s7, 1024  ;;  %s1137_s15 = smov [#allocation2]  }
  0x54   : > { %p992_p6 = scmp.ne.s32.totalorder %s1302_s7, %s991_s6  ;;  %s996_s28 = sshll.u32 %s1137_s15, 4  ;;  %s997_s28 = int_to_ptr.vmem [resolvable:$false] %s996_s28 }
  0x55   : > { %s998_s27 = scalar_lea.vmem %s997_s28, 2048  ;;  %p999_p0 = scmp.lt.s32.totalorder %s1302_s7, %s997_s28 }
  0x56   : > { %p994_p10 = pnand %p992_p6, %p978_p7  ;;  %p1000_p8 = scmp.lt.s32.totalorder %s998_s27, %s991_s6 }
  0x58   : > { %p995_p12 = pneg %p994_p10  ;;  %p1001_p11 = por %p1000_p8, %p999_p0 }
  0x5a   : > { %p1002_p13 = pnand %p1001_p11, %p995_p12 }
  0x5c   : > { %1005 = shalt.err (!%p1002_p13)
}
  0x5d   : > { %s1138_s8 = smov 192   ;;  %s1580_s1 = smov 4  }
  0x5e   : > { %s1581_s12 = smov 64   ;;  %p1582_p7 = scmp.ne.s32.totalorder %s1571_s5, 0 }
  0x5f   : > { %828 = dma.hbm_to_vmem [thread:$0]  (!%p1579_p5), %s1309_s23, 1024, %s1302_s7, %s1321_s24, %s1138_s8, %s1581_s12, %s1580_s1  }
  0x60   : > { %187 = sbr.rel (%p1582_p7) target bundleno = 420 (0x1a4), region = 32  ;;  %s189_s10 = sand.u32 (!%p1582_p7), 1, %s1108_s16  }
  0x61   : > { %s718_s25 = sshll.u32 (!%p1582_p7), %s189_s10, 6  ;;  %s190_s11 = scalar_lea.sflag (!%p1582_p7), [#allocation3], %s189_s10 }
  0x62   : > { %s1354_s6 = scalar_lea.vmem (!%p1582_p7), [#allocation2], %s718_s25  ;;  %p1583_p9 = scmp.ne.s32.totalorder (!%p1582_p7), %s1567_s29, 0 }
  0x67   : > { %1079 = dma.done.wait (%p1583_p9), %s190_s11, 1024  }
  0x68   : > { %1081 = vsyncadd (%p1583_p9), %s190_s11, 4294966272  ;;  %p1584_p1 = scmp.ne.s32.totalorder %s1565_s26, 0 }
  0x6a   : > { %1083 = dma.done.wait (%p1584_p1), [#allocation6], 3072  }
  0x6b   : > { %1085 = vsyncadd (%p1584_p1), [#allocation6], 4294964224  ;;  %s217_s5 = sand.u32 1, %s1096_s13   ;;  %p721_p5 = scmp.ne.s32.totalorder %s1116_s18, 0 }
  0x6c   : > { %s720_s9 = sshll.u32 %s217_s5, 7  ;;  %v1139_v0 = vmov (!%p721_p5), 0.0  }
  0x6d   : > { %s1367_s23 = scalar_lea.vmem [#allocation7], %s720_s9  ;;  %226 = sbr.rel (%p721_p5) target bundleno = 118 (0x76), region = 44 }
  0x6e   : > { %227 = vst [vmem:[%s1367_s23] sm:$0xff] (!%p721_p5), %v1139_v0  ;;  %228 = vst [vmem:[%s1367_s23 + $0x8] sm:$0xff] (!%p721_p5), %v1139_v0 }
  0x6f   : > { %229 = vst [vmem:[%s1367_s23 + $0x10] sm:$0xff] (!%p721_p5), %v1139_v0  ;;  %230 = vst [vmem:[%s1367_s23 + $0x18] sm:$0xff] (!%p721_p5), %v1139_v0 }
  0x70   : > { %231 = vst [vmem:[%s1367_s23 + $0x20] sm:$0xff] (!%p721_p5), %v1139_v0  ;;  %232 = vst [vmem:[%s1367_s23 + $0x28] sm:$0xff] (!%p721_p5), %v1139_v0 }
  0x71   : > { %233 = vst [vmem:[%s1367_s23 + $0x30] sm:$0xff] (!%p721_p5), %v1139_v0  ;;  %234 = vst [vmem:[%s1367_s23 + $0x38] sm:$0xff] (!%p721_p5), %v1139_v0 }
  0x72   : > { %235 = vst [vmem:[%s1367_s23 + $0x40] sm:$0xff] (!%p721_p5), %v1139_v0  ;;  %236 = vst [vmem:[%s1367_s23 + $0x48] sm:$0xff] (!%p721_p5), %v1139_v0 }
  0x73   : > { %237 = vst [vmem:[%s1367_s23 + $0x50] sm:$0xff] (!%p721_p5), %v1139_v0  ;;  %238 = vst [vmem:[%s1367_s23 + $0x58] sm:$0xff] (!%p721_p5), %v1139_v0 }
  0x74   : > { %239 = vst [vmem:[%s1367_s23 + $0x60] sm:$0xff] %v1139_v0  ;;  %240 = vst [vmem:[%s1367_s23 + $0x68] sm:$0xff] %v1139_v0 }
  0x75   : > { %241 = vst [vmem:[%s1367_s23 + $0x70] sm:$0xff] %v1139_v0  ;;  %242 = vst [vmem:[%s1367_s23 + $0x78] sm:$0xff] %v1139_v0 }
  0x76 PF: > { %s722_s26 = sshll.u32 %s1116_s18, 7  ;;  %v940_v1 = vld [vmem:[%s1354_s6] sm:$0xff]   ;;  %v942_v11 = vld [vmem:[%s1354_s6 + $0x8] sm:$0xff]   ;;  %v944_v13 = vld [vmem:[%s1354_s6 + $0x10] sm:$0xff]   ;;  %p740_p4 = scmp.ne.s32.totalorder %s1116_s18, 2 }
  0x77   : > { %s244_s29 = sshra.s32 %s722_s26, 3  ;;  %v941_v2 = vld [vmem:[%s1354_s6 + $0x20] sm:$0xff]   ;;  %780 = vmatprep.mubr.bf16.mxu0 %v940_v1  ;;  %v943_v12 = vld [vmem:[%s1354_s6 + $0x28] sm:$0xff]   ;;  %v945_v14 = vld [vmem:[%s1354_s6 + $0x30] sm:$0xff]  }
  0x78   : > { %s723_s24 = sshll.u32 %s244_s29, 2  ;;  %788 = vmatprep.mubr.bf16.mxu1 %v941_v2  ;;  %v946_v15 = vld [vmem:[%s1354_s6 + $0x18] sm:$0xff]   ;;  %v266_v17 = vld [vmem:[%s1367_s23 + $0x10] sm:$0xff]  ;;  %v264_v19 = vld [vmem:[%s1367_s23] sm:$0xff] }
  0x79   : > { %s1389_s7 = scalar_lea.vmem [#allocation5], %s723_s24  ;;  %v947_v16 = vld [vmem:[%s1354_s6 + $0x38] sm:$0xff]   ;;  %v265_v29 = vld [vmem:[%s1367_s23 + $0x8] sm:$0xff]  ;;  %v268_v43 = vld [vmem:[%s1367_s23 + $0x20] sm:$0xff] }
  0x7a   : > { %v932_v3 = vld [vmem:[%s1389_s7] sm:$0xff]   ;;  %v933_v4 = vld [vmem:[%s1389_s7 + $0x8] sm:$0xff]   ;;  %v934_v5 = vld [vmem:[%s1389_s7 + $0x10] sm:$0xff]  }
  0x7b   : > { %764 = vmatprep.subr.bf16.mxu0 %v932_v3  ;;  %796 = vmatprep.subr.bf16.mxu1 %v932_v3  ;;  %v935_v6 = vld [vmem:[%s1389_s7 + $0x18] sm:$0xff]   ;;  %v936_v7 = vld [vmem:[%s1389_s7 + $0x20] sm:$0xff]   ;;  %v937_v8 = vld [vmem:[%s1389_s7 + $0x28] sm:$0xff]  }
  0x7c   : > { %765 = vmatpush3.bf16.msra.mxu0 %v932_v3  ;;  %804 = vmatpush3.bf16.msra.mxu1 %v932_v3  ;;  %v938_v9 = vld [vmem:[%s1389_s7 + $0x30] sm:$0xff]   ;;  %v939_v10 = vld [vmem:[%s1389_s7 + $0x38] sm:$0xff]   ;;  %v272_v20 = vld [vmem:[%s1367_s23 + $0x40] sm:$0xff] }
  0x7d   : > { %766 = vmatprep.subr.bf16.mxu0 %v933_v4  ;;  %797 = vmatprep.subr.bf16.mxu1 %v933_v4  ;;  %v274_v18 = vld [vmem:[%s1367_s23 + $0x50] sm:$0xff]  ;;  %v267_v23 = vld [vmem:[%s1367_s23 + $0x18] sm:$0xff]  ;;  %v273_v30 = vld [vmem:[%s1367_s23 + $0x48] sm:$0xff] }
  0x7e   : > { %v275_v24 = vld [vmem:[%s1367_s23 + $0x58] sm:$0xff]  ;;  %v270_v41 = vld [vmem:[%s1367_s23 + $0x30] sm:$0xff]  ;;  %v276_v44 = vld [vmem:[%s1367_s23 + $0x60] sm:$0xff] }
  0x7f   : > { %v278_v42 = vld [vmem:[%s1367_s23 + $0x70] sm:$0xff]  ;;  %v271_v47 = vld [vmem:[%s1367_s23 + $0x38] sm:$0xff]  ;;  %v269_v53 = vld [vmem:[%s1367_s23 + $0x28] sm:$0xff] }
  0x80   : > { %767 = vmatpush3.bf16.msra.mxu0 %v933_v4  ;;  %805 = vmatpush3.bf16.msra.mxu1 %v933_v4  ;;  %v279_v48 = vld [vmem:[%s1367_s23 + $0x78] sm:$0xff]  ;;  %v277_v54 = vld [vmem:[%s1367_s23 + $0x68] sm:$0xff]  ;;  %v741_v2 = vld [vmem:[%s1547_s2] ss:$0 sm:$0xff] (!%p740_p4) }
  0x81   : > { %768 = vmatprep.subr.bf16.mxu0 %v934_v5  ;;  %798 = vmatprep.subr.bf16.mxu1 %v934_v5 }
  0x84   : > { %769 = vmatpush3.bf16.msra.mxu0 %v934_v5  ;;  %806 = vmatpush3.bf16.msra.mxu1 %v934_v5 }
  0x85   : > { %770 = vmatprep.subr.bf16.mxu0 %v935_v6  ;;  %799 = vmatprep.subr.bf16.mxu1 %v935_v6 }
  0x88   : > { %771 = vmatpush3.bf16.msra.mxu0 %v935_v6  ;;  %807 = vmatpush3.bf16.msra.mxu1 %v935_v6 }
  0x89   : > { %772 = vmatprep.subr.bf16.mxu0 %v936_v7  ;;  %800 = vmatprep.subr.bf16.mxu1 %v936_v7 }
  0x8c   : > { %773 = vmatpush3.bf16.msra.mxu0 %v936_v7  ;;  %808 = vmatpush3.bf16.msra.mxu1 %v936_v7 }
  0x8d   : > { %774 = vmatprep.subr.bf16.mxu0 %v937_v8  ;;  %801 = vmatprep.subr.bf16.mxu1 %v937_v8 }
  0x90   : > { %775 = vmatpush3.bf16.msra.mxu0 %v937_v8  ;;  %809 = vmatpush3.bf16.msra.mxu1 %v937_v8 }
  0x91   : > { %776 = vmatprep.subr.bf16.mxu0 %v938_v9  ;;  %802 = vmatprep.subr.bf16.mxu1 %v938_v9 }
  0x94   : > { %777 = vmatpush3.bf16.msra.mxu0 %v938_v9  ;;  %810 = vmatpush3.bf16.msra.mxu1 %v938_v9 }
  0x95   : > { %778 = vmatprep.subr.bf16.mxu0 %v939_v10  ;;  %803 = vmatprep.subr.bf16.mxu1 %v939_v10 }
  0x98   : > { %779 = vmatpush3.bf16.msra.mxu0 %v939_v10  ;;  %811 = vmatpush3.bf16.msra.mxu1 %v939_v10 }
  0x9b   : > { %781 = vmatmul.mubr.bf16.vlgmr.msra.gmra.mrb[0].mxu0 %v942_v11  ;;  %789 = vmatmul.mubr.bf16.vlgmr.msra.gmra.mrb[0].mxu1 %v943_v12 }
  0x9c   : > { %784 = vmatprep.mubr.bf16.mxu0 %v944_v13  ;;  %792 = vmatprep.mubr.bf16.mxu1 %v945_v14 }
  0xa3   : > { %785 = vmatmul.mubr.bf16.gmra.mrb[4].mxu0 %v946_v15  ;;  %793 = vmatmul.mubr.bf16.gmra.mrb[4].mxu1 %v947_v16 }
 0x16e   : > { %v782_v21 = vpop.f32.mrb[0].mxu0  ;;  %v790_v22 = vpop.f32.mrb[0].mxu1 }
 0x16f   : > { %v491_v25 = vadd.f32 %v782_v21, %v266_v17  ;;  %v499_v26 = vadd.f32 %v790_v22, %v274_v18  ;;  %v426_v27 = vpop.f32.mrb[1].mxu0  ;;  %v458_v28 = vpop.f32.mrb[1].mxu1 }
 0x170   : > { %v489_v31 = vadd.f32 %v426_v27, %v264_v19  ;;  %v497_v32 = vadd.f32 %v458_v28, %v272_v20  ;;  %v783_v33 = vpop.f32.mrb[2].mxu0  ;;  %v791_v34 = vpop.f32.mrb[2].mxu1 }
 0x171   : > { %507 = vst [vmem:[%s1367_s23 + $0x10] sm:$0xff] %v491_v25  ;;  %515 = vst [vmem:[%s1367_s23 + $0x50] sm:$0xff] %v499_v26  ;;  %v492_v35 = vadd.f32 %v783_v33, %v267_v23  ;;  %v500_v36 = vadd.f32 %v791_v34, %v275_v24  ;;  %v429_v37 = vpop.f32.mrb[3].mxu0  ;;  %v461_v38 = vpop.f32.mrb[3].mxu1 }
 0x172   : > { %505 = vst [vmem:[%s1367_s23] sm:$0xff] %v489_v31  ;;  %513 = vst [vmem:[%s1367_s23 + $0x40] sm:$0xff] %v497_v32  ;;  %v490_v39 = vadd.f32 %v429_v37, %v265_v29  ;;  %v498_v40 = vadd.f32 %v461_v38, %v273_v30 }
 0x173   : > { %508 = vst [vmem:[%s1367_s23 + $0x18] sm:$0xff] %v492_v35  ;;  %516 = vst [vmem:[%s1367_s23 + $0x58] sm:$0xff] %v500_v36 }
 0x174   : > { %506 = vst [vmem:[%s1367_s23 + $0x8] sm:$0xff] %v490_v39  ;;  %514 = vst [vmem:[%s1367_s23 + $0x48] sm:$0xff] %v498_v40 }
 0x176   : > { %v786_v45 = vpop.f32.mrb[4].mxu0  ;;  %v794_v46 = vpop.f32.mrb[4].mxu1  ;;  %524 = sbr.rel (%p740_p4) target bundleno = 394 (0x18a), region = 48 }
 0x177   : > { %v495_v49 = vadd.f32 %v786_v45, %v270_v41  ;;  %v503_v50 = vadd.f32 %v794_v46, %v278_v42  ;;  %v442_v51 = vpop.f32.mrb[5].mxu0  ;;  %v474_v52 = vpop.f32.mrb[5].mxu1 }
 0x178   : > { %v493_v55 = vadd.f32 %v442_v51, %v268_v43  ;;  %v501_v56 = vadd.f32 %v474_v52, %v276_v44  ;;  %v787_v57 = vpop.f32.mrb[6].mxu0  ;;  %v795_v58 = vpop.f32.mrb[6].mxu1  ;;  %v527_v6 = vld [vmem:[%s1367_s23 + $0x10] sm:$0xff] (!%p740_p4) }
 0x179   : > { %511 = vst [vmem:[%s1367_s23 + $0x30] sm:$0xff] %v495_v49  ;;  %519 = vst [vmem:[%s1367_s23 + $0x70] sm:$0xff] %v503_v50  ;;  %v496_v59 = vadd.f32 %v787_v57, %v271_v47  ;;  %v504_v60 = vadd.f32 %v795_v58, %v279_v48  ;;  %v445_v61 = vpop.f32.mrb[7].mxu0  ;;  %v477_v62 = vpop.f32.mrb[7].mxu1  ;;  %v525_v1 = vld [vmem:[%s1367_s23] sm:$0xff] (!%p740_p4)  ;;  %v550_v9 = vadd.f32 (!%p740_p4), %v741_v2, %v527_v6  ;;  %v535_v21 = vld [vmem:[%s1367_s23 + $0x50] sm:$0xff] (!%p740_p4) }
 0x17a   : > { %509 = vst [vmem:[%s1367_s23 + $0x20] sm:$0xff] %v493_v55  ;;  %517 = vst [vmem:[%s1367_s23 + $0x60] sm:$0xff] %v501_v56  ;;  %v494_v63 = vadd.f32 %v445_v61, %v269_v53  ;;  %v502_v0 = vadd.f32 %v477_v62, %v277_v54  ;;  %v548_v4 = vadd.f32 (!%p740_p4), %v741_v2, %v525_v1  ;;  %v528_v7 = vld [vmem:[%s1367_s23 + $0x18] sm:$0xff] (!%p740_p4)  ;;  %v533_v19 = vld [vmem:[%s1367_s23 + $0x40] sm:$0xff] (!%p740_p4) }
 0x17b   : > { %512 = vst [vmem:[%s1367_s23 + $0x38] sm:$0xff] %v496_v59  ;;  %520 = vst [vmem:[%s1367_s23 + $0x78] sm:$0xff] %v504_v60  ;;  %v526_v3 = vld [vmem:[%s1367_s23 + $0x8] sm:$0xff] (!%p740_p4)  ;;  %v551_v10 = vadd.f32 (!%p740_p4), %v741_v2, %v528_v7  ;;  %v566_v22 = vmax.f32 (!%p740_p4), %v550_v9, 0.0  ;;  %v536_v26 = vld [vmem:[%s1367_s23 + $0x58] sm:$0xff] (!%p740_p4)  ;;  %v556_v31 = vadd.f32 (!%p740_p4), %v741_v2, %v533_v19  ;;  %v558_v36 = vadd.f32 (!%p740_p4), %v741_v2, %v535_v21 }
 0x17c   : > { %510 = vst [vmem:[%s1367_s23 + $0x28] sm:$0xff] %v494_v63  ;;  %518 = vst [vmem:[%s1367_s23 + $0x68] sm:$0xff] %v502_v0  ;;  %v549_v5 = vadd.f32 (!%p740_p4), %v741_v2, %v526_v3  ;;  %v564_v15 = vmax.f32 (!%p740_p4), %v548_v4, 0.0  ;;  %v534_v20 = vld [vmem:[%s1367_s23 + $0x48] sm:$0xff] (!%p740_p4)  ;;  %v559_v37 = vadd.f32 (!%p740_p4), %v741_v2, %v536_v26 }
 0x17d   : > { %v567_v23 = vmax.f32 %v551_v10, 0.0  ;;  %v557_v32 = vadd.f32 %v741_v2, %v534_v20  ;;  %582 = vst [vmem:[%s1367_s23 + $0x10] sm:$0xff] %v566_v22  ;;  %v572_v39 = vmax.f32 %v556_v31, 0.0  ;;  %v574_v43 = vmax.f32 %v558_v36, 0.0 }
 0x17e   : > { %v565_v16 = vmax.f32 %v549_v5, 0.0  ;;  %580 = vst [vmem:[%s1367_s23] sm:$0xff] %v564_v15  ;;  %v575_v44 = vmax.f32 %v559_v37, 0.0 }
 0x17f   : > { %583 = vst [vmem:[%s1367_s23 + $0x18] sm:$0xff] %v567_v23  ;;  %v573_v40 = vmax.f32 %v557_v32, 0.0  ;;  %588 = vst [vmem:[%s1367_s23 + $0x40] sm:$0xff] %v572_v39 }
 0x180   : > { %v531_v13 = vld [vmem:[%s1367_s23 + $0x30] sm:$0xff]  ;;  %581 = vst [vmem:[%s1367_s23 + $0x8] sm:$0xff] %v565_v16  ;;  %590 = vst [vmem:[%s1367_s23 + $0x50] sm:$0xff] %v574_v43 }
 0x181   : > { %v529_v8 = vld [vmem:[%s1367_s23 + $0x20] sm:$0xff]  ;;  %v554_v18 = vadd.f32 %v741_v2, %v531_v13  ;;  %v539_v33 = vld [vmem:[%s1367_s23 + $0x70] sm:$0xff]  ;;  %589 = vst [vmem:[%s1367_s23 + $0x48] sm:$0xff] %v573_v40  ;;  %591 = vst [vmem:[%s1367_s23 + $0x58] sm:$0xff] %v575_v44 }
 0x182   : > { %v552_v11 = vadd.f32 %v741_v2, %v529_v8  ;;  %v532_v14 = vld [vmem:[%s1367_s23 + $0x38] sm:$0xff]  ;;  %v537_v27 = vld [vmem:[%s1367_s23 + $0x60] sm:$0xff]  ;;  %v562_v42 = vadd.f32 %v741_v2, %v539_v33 }
 0x183   : > { %v530_v12 = vld [vmem:[%s1367_s23 + $0x28] sm:$0xff]  ;;  %v555_v25 = vadd.f32 %v741_v2, %v532_v14  ;;  %v570_v30 = vmax.f32 %v554_v18, 0.0  ;;  %v540_v34 = vld [vmem:[%s1367_s23 + $0x78] sm:$0xff]  ;;  %v560_v38 = vadd.f32 %v741_v2, %v537_v27 }
 0x184   : > { %v553_v17 = vadd.f32 %v741_v2, %v530_v12  ;;  %v568_v24 = vmax.f32 %v552_v11, 0.0  ;;  %v538_v28 = vld [vmem:[%s1367_s23 + $0x68] sm:$0xff]  ;;  %v563_v46 = vadd.f32 %v741_v2, %v540_v34  ;;  %v578_v48 = vmax.f32 %v562_v42, 0.0 }
 0x185   : > { %v571_v35 = vmax.f32 %v555_v25, 0.0  ;;  %586 = vst [vmem:[%s1367_s23 + $0x30] sm:$0xff] %v570_v30  ;;  %v561_v41 = vadd.f32 %v741_v2, %v538_v28  ;;  %v576_v45 = vmax.f32 %v560_v38, 0.0 }
 0x186   : > { %v569_v29 = vmax.f32 %v553_v17, 0.0  ;;  %584 = vst [vmem:[%s1367_s23 + $0x20] sm:$0xff] %v568_v24  ;;  %v579_v49 = vmax.f32 %v563_v46, 0.0  ;;  %594 = vst [vmem:[%s1367_s23 + $0x70] sm:$0xff] %v578_v48 }
 0x187   : > { %587 = vst [vmem:[%s1367_s23 + $0x38] sm:$0xff] %v571_v35  ;;  %v577_v47 = vmax.f32 %v561_v41, 0.0  ;;  %592 = vst [vmem:[%s1367_s23 + $0x60] sm:$0xff] %v576_v45 }
 0x188   : > { %585 = vst [vmem:[%s1367_s23 + $0x28] sm:$0xff] %v569_v29  ;;  %595 = vst [vmem:[%s1367_s23 + $0x78] sm:$0xff] %v579_v49 }
 0x189   : > { %593 = vst [vmem:[%s1367_s23 + $0x68] sm:$0xff] %v577_v47 }
 0x18a PF: > { %s747_s18 = sshll.u32 %s1120_s19, 11  ;;  %s610_s12 = sshll.u32 %s1367_s23, 4  ;;  %s1480_s12 = int_to_ptr.vmem [resolvable:$true] %s610_s12 }
 0x18b   : > { %s1477_s1 = scalar_lea.hbm %s1548_s3, %s747_s18  ;;  %s1484_s10 = scalar_lea.sflag [#allocation4], %s217_s5 }
 0x18c   : > { %s1006_s25 = scalar_lea.vmem %s1480_s12, 2048  ;;  %p1585_p3 = scmp.ne.s32.totalorder %s1568_s30, 0 }
 0x18d   : > { %p1007_p2 = scmp.ne.s32.totalorder %s1480_s12, %s1006_s25  ;;  %s1140_s19 = smov [#allocation7]  }
 0x18e   : > { %s1010_s11 = sshll.u32 %s1140_s19, 4  ;;  %s1011_s11 = int_to_ptr.vmem [resolvable:$false] %s1010_s11 }
 0x18f   : > { %p1008_p6 = pnand %p1007_p2, %p1585_p3  ;;  %s1012_s6 = scalar_lea.vmem %s1011_s11, 4096 }
 0x190   : > { %p1013_p12 = scmp.lt.s32.totalorder %s1480_s12, %s1011_s11  ;;  %p1014_p0 = scmp.lt.s32.totalorder %s1012_s6, %s1006_s25 }
 0x191   : > { %p1009_p10 = pneg %p1008_p6 }
 0x192   : > { %p1015_p8 = por %p1014_p0, %p1013_p12 }
 0x194   : > { %p1016_p11 = pnand %p1015_p8, %p1009_p10 }
 0x196   : > { %1019 = shalt.err (!%p1016_p11)
}
 0x197   : > { %s1020_s5 = scalar_lea.hbm %s1477_s1, 2048  ;;  %s1024_s26 = scalar_lea.hbm %s1548_s3, 6144 }
 0x198   : > { %p1021_p13 = scmp.ne.s32.totalorder %s1477_s1, %s1020_s5  ;;  %p1025_p1 = scmp.lt.u32.totalorder %s1477_s1, %s1548_s3 }
 0x199   : > { %p1026_p5 = scmp.lt.u32.totalorder %s1024_s26, %s1020_s5  ;;  %p1028_p2 = scmp.lt.u32.totalorder %s1020_s5, %s1477_s1 }
 0x19a   : > { %p1022_p7 = pnand %p1021_p13, %p1585_p3 }
 0x19b   : > { %p1027_p4 = por %p1026_p5, %p1025_p1 }
 0x19c   : > { %p1023_p9 = pneg %p1022_p7 }
 0x19d   : > { %p1029_p6 = por %p1028_p2, %p1027_p4 }
 0x19f   : > { %p1030_p10 = pnand %p1029_p6, %p1023_p9 }
 0x1a1   : > { %1033 = shalt.err (!%p1030_p10)
}
 0x1a2   : > { %s1141_s7 = smov 128   ;;  %s1142_s15 = smov 8  }
 0x1a3   : > { %819 = dma.vmem_to_hbm [thread:$0]  (%p1585_p3), %s1480_s12, 2048, %s1477_s1, %s1484_s10, %s1141_s7, %s1141_s7, %s1142_s15  }
 0x1a4 PF: > { %s1586_s28 = sld [smem:[#allocation11_spill]]  ;;  %s1587_s18 = sld [smem:[#allocation13_spill]] }
 0x1a5   : > { %p836_p12 = scmp.ge.s32.totalorder %s1132_s22, 2 }
 0x1aa   : > { %s625_s27 = sand.u32 1, %s1586_s28   ;;  %p1588_p0 = scmp.ne.s32.totalorder %s1587_s18, 0 }
 0x1ab   : > { %s626_s8 = scalar_lea.sflag [#allocation4], %s625_s27 }
 0x1ac   : > { %p830_p8 = pnand %p836_p12, %p1588_p0 }
 0x1ae   : > { %1087 = dma.done.wait (!%p830_p8), %s626_s8, 2048  }
 0x1af   : > { %1089 = vsyncadd (!%p830_p8), %s626_s8, 4294965248  ;;  %s20_s22 = sadd.s32 1, %s1132_s22   ;;  %s1589_s18 = sld [smem:[#allocation12_spill]] }
 0x1b0   : > { %p17_p11 = scmp.ge.s32.totalorder %s20_s22, 11   ;;  %s1590_s30 = sld [smem:[#allocation14_spill]] }
 0x1b1   : > { %s1591_s1 = sld [smem:[#allocation15_spill]]  ;;  %s1592_s12 = smov %s1096_s13 }
 0x1b2   : > { %s1593_s13 = smov %s1100_s14  ;;  %s1594_s14 = smov %s1314_s4 }
 0x1b3   : > { %s1595_s15 = smov %s1108_s16  ;;  %s1596_s16 = smov %s1112_s17 }
 0x1b4   : > { %s1597_s17 = smov %s1319_s20  ;;  %s1598_s19 = smov %s1128_s21 }
 0x1b5   :  { %19 = sbr.rel (!%p17_p11) target bundleno = 12 (0xc), region = 90 }
 0x1b6   : > { %s1599_s20 = smov %s1590_s30 }
 0x1b7   : > { %s1600_s21 = smov %s1591_s1 }
 0x1bc   :  { %631 = vsyncpa [#allocation3], 1 }
 0x1bd   :  { %633 = vsyncpa [#allocation3 + $0x1], 1 }
 0x1be   :  { %634 = vsyncpa [#allocation6], 1 }
 0x1bf   :  { %635 = vsyncpa [#allocation4], 1 }
 0x1c0   :  { %637 = vsyncpa [#allocation4 + $0x1], 1 }

</bundles_post_ra>
